<compile_context>
chip_gen: v5e
topology: v5e:2x2
jax: 0.10.0
libtpu: 0.0.40
codegen_flags: <defaults>
</compile_context>

<pallas_src>
import jax
import jax.numpy as jnp
from jax.experimental import pallas as pl
from jax.experimental.pallas import tpu as pltpu

# ---------------- problem sizes (consistent with the module) --------------------
NUM_FEATURES = 16      # config['dataset']['num_features']
NUM_CLASSES = 2        # config['dataset']['num_classes']  -> network_out = 1
NETWORK_OUT = 1 if NUM_CLASSES == 2 else NUM_CLASSES
H1, H2, H3 = 100, 100, 10

LANE = 128
SUB = 8


def _pad_to(n, m):
    return ((n + m - 1) // m) * m


H1P = _pad_to(H1, LANE)   # 128
H2P = _pad_to(H2, LANE)   # 128
H3P = _pad_to(H3, LANE)   # 128


# ---------------- Pallas kernel: fused 4-layer MLP -------------------------------
def treenet_mlp_kernel(x_ref, w1_ref, b1_ref, w2_ref, b2_ref,
                       w3_ref, b3_ref, w4_ref, b4_ref, o_ref):
    # x_ref: (TB, 16) batch tile; weight/bias blocks are the same resident tile every step.
    h = jnp.tanh(jnp.dot(x_ref[...], w1_ref[...],
                         preferred_element_type=jnp.float32) + b1_ref[...])
    h = jnp.tanh(jnp.dot(h, w2_ref[...],
                         preferred_element_type=jnp.float32) + b2_ref[...])
    h = jnp.tanh(jnp.dot(h, w3_ref[...],
                         preferred_element_type=jnp.float32) + b3_ref[...])
    # Final layer (10 -> 1): elementwise mul (VPU) + lane reduction (XLU); avoids an
    # N=1 MXU matmul and produces the narrow (TB, 1) output tile directly.
    o_ref[...] = jnp.sum(h * w4_ref[...], axis=-1, keepdims=True) + b4_ref[...]


# ---------------- one-time constant prep (hoisted out of the hot path) -----------
def prepare_padded_params(params):
    (w1, b1), (w2, b2), (w3, b3), (w4, b4) = params

    def pad2(a, r, c):
        return jnp.pad(a, ((0, r - a.shape[0]), (0, c - a.shape[1])))

    w1p = pad2(w1, NUM_FEATURES, H1P)          # (16, 128)  K stays unpadded (16 % 8 == 0)
    b1p = pad2(b1[None, :], 1, H1P)            # (1, 128)
    w2p = pad2(w2, H1P, H2P)                   # (128, 128)
    b2p = pad2(b2[None, :], 1, H2P)            # (1, 128)
    w3p = pad2(w3, H2P, H3P)                   # (128, 128)
    b3p = pad2(b3[None, :], 1, H3P)            # (1, 128)
    w4p = pad2(w4.T, 1, H3P)                   # (1, 128) row vector of the 10->1 weights
    b4p = b4[None, :]                          # (1, 1)
    return (w1p, b1p, w2p, b2p, w3p, b3p, w4p, b4p)


@jax.jit
def treenet_forward(x, padded_params):
    """x: (B, NUM_FEATURES) float32.  Returns (B, NETWORK_OUT) float32."""
    w1p, b1p, w2p, b2p, w3p, b3p, w4p, b4p = padded_params
    B, F = x.shape

    # batch tiling: x/out tiles are double-buffered by the pipeline; weights stay resident.
    TB = min(1024, _pad_to(B, SUB))
    Bp = _pad_to(B, TB)
    xp = jnp.pad(x, ((0, Bp - B), (0, 0)))     # only x is padded per call (rows only)

    row = lambda i: (i, 0)                     # batch-tiled operands
    rep = lambda i: (0, 0)                     # VMEM-resident constants

    cost = pl.CostEstimate(
        flops=2 * Bp * (F * H1 + H1 * H2 + H2 * H3 + H3 * NETWORK_OUT),
        transcendentals=Bp * (H1 + H2 + H3),
        bytes_accessed=4 * (Bp * F + Bp * NETWORK_OUT
                            + F * H1P + H1P * H2P + H2P * H3P + H3P
                            + H1P + H2P + H3P + 1),
    )

    out = pl.pallas_call(
        treenet_mlp_kernel,
        out_shape=jax.ShapeDtypeStruct((Bp, NETWORK_OUT), jnp.float32),
        grid=(Bp // TB,),
        in_specs=[
            pl.BlockSpec((TB, F), row),        # x tile, real 16-wide feature dim
            pl.BlockSpec((F, H1P), rep),       # w1
            pl.BlockSpec((1, H1P), rep),       # b1
            pl.BlockSpec((H1P, H2P), rep),     # w2
            pl.BlockSpec((1, H2P), rep),       # b2
            pl.BlockSpec((H2P, H3P), rep),     # w3
            pl.BlockSpec((1, H3P), rep),       # b3
            pl.BlockSpec((1, H3P), rep),       # w4 (row vector)
            pl.BlockSpec((1, 1), rep),         # b4
        ],
        out_specs=pl.BlockSpec((TB, NETWORK_OUT), row),
        compiler_params=pltpu.CompilerParams(
            dimension_semantics=("parallel",)),   # shard batch tiles over v7x's 2 TCs
        cost_estimate=cost,
    )(xp, w1p, b1p, w2p, b2p, w3p, b3p, w4p, b4p)

    return out[:B, :]


# ---------------- deterministic parameter init (synthetic, not a checkpoint) ----
def init_params(key):
    dims = [(NUM_FEATURES, H1), (H1, H2), (H2, H3), (H3, NETWORK_OUT)]
    params = []
    for i, (din, dout) in enumerate(dims):
        kw, kb = jax.random.split(jax.random.fold_in(key, i))
        scale = 1.0 / jnp.sqrt(jnp.float32(din))
        w = jax.random.uniform(kw, (din, dout), jnp.float32, -scale, scale)
        b = jax.random.uniform(kb, (dout,), jnp.float32, -scale, scale)
        params.append((w, b))
    return params


def reference_forward(x, params):
    # Pure-JAX reference matching the PyTorch mn_model exactly.
    (w1, b1), (w2, b2), (w3, b3), (w4, b4) = params
    h = jnp.tanh(x @ w1 + b1)
    h = jnp.tanh(h @ w2 + b2)
    h = jnp.tanh(h @ w3 + b3)
    return h @ w4 + b4


# TODO(synk): compute_APL (sklearn DecisionTreeClassifier) and the SurrogateNetwork
#             (ReLU/Softplus head) regulariser are auxiliary training utilities, not part of
#             forward; not kernelized.

if __name__ == "__main__":
    key = jax.random.PRNGKey(0)
    kx, kp = jax.random.split(key)
    x = jax.random.normal(kx, (8, NUM_FEATURES), jnp.float32)
    params = init_params(kp)

    padded_params = prepare_padded_params(params)   # constants padded once, off the hot path

    y = treenet_forward(x, padded_params)
    y = jax.block_until_ready(y)

    y_ref = reference_forward(x, params)
    assert y.shape == (8, NETWORK_OUT)
    assert jnp.max(jnp.abs(y - y_ref)) < 1e-4

    print("KERNEL_OK")
</pallas_src>

<mosaic_0001>
module attributes {stable_mosaic.version = 11 : i64} {
  func.func @treenet_mlp_kernel(%arg0: i32, %arg1: memref<8x16xf32, #tpu.memory_space<vmem>>, %arg2: memref<16x128xf32, #tpu.memory_space<vmem>>, %arg3: memref<1x128xf32, #tpu.memory_space<vmem>>, %arg4: memref<128x128xf32, #tpu.memory_space<vmem>>, %arg5: memref<1x128xf32, #tpu.memory_space<vmem>>, %arg6: memref<128x128xf32, #tpu.memory_space<vmem>>, %arg7: memref<1x128xf32, #tpu.memory_space<vmem>>, %arg8: memref<1x128xf32, #tpu.memory_space<vmem>>, %arg9: memref<1x1xf32, #tpu.memory_space<vmem>>, %arg10: memref<8x1xf32, #tpu.memory_space<vmem>>) attributes {dimension_semantics = [#tpu.dimension_semantics<parallel>], iteration_bounds = array<i64: 1>, scalar_prefetch = 0 : i64, scratch_operands = 0 : i64, tpu.core_type = #tpu.core_type<tc>, window_params = [{transform_indices = @transform_0, window_bounds = array<i64: 8, 16>}, {pipeline_mode = #tpu.pipeline_mode<synchronous>, transform_indices = @transform_1, window_bounds = array<i64: 16, 128>}, {pipeline_mode = #tpu.pipeline_mode<synchronous>, transform_indices = @transform_2, window_bounds = array<i64: 1, 128>}, {pipeline_mode = #tpu.pipeline_mode<synchronous>, transform_indices = @transform_3, window_bounds = array<i64: 128, 128>}, {pipeline_mode = #tpu.pipeline_mode<synchronous>, transform_indices = @transform_4, window_bounds = array<i64: 1, 128>}, {pipeline_mode = #tpu.pipeline_mode<synchronous>, transform_indices = @transform_5, window_bounds = array<i64: 128, 128>}, {pipeline_mode = #tpu.pipeline_mode<synchronous>, transform_indices = @transform_6, window_bounds = array<i64: 1, 128>}, {pipeline_mode = #tpu.pipeline_mode<synchronous>, transform_indices = @transform_7, window_bounds = array<i64: 1, 128>}, {pipeline_mode = #tpu.pipeline_mode<synchronous>, transform_indices = @transform_8, window_bounds = array<i64: 1, 1>}, {transform_indices = @transform_9, window_bounds = array<i64: 8, 1>}]} {
    %c0 = arith.constant 0 : index
    %c0_0 = arith.constant 0 : index
    %0 = vector.load %arg1[%c0, %c0_0] : memref<8x16xf32, #tpu.memory_space<vmem>>, vector<8x16xf32>
    %c0_1 = arith.constant 0 : index
    %c0_2 = arith.constant 0 : index
    %1 = vector.load %arg2[%c0_1, %c0_2] : memref<16x128xf32, #tpu.memory_space<vmem>>, vector<16x128xf32>
    %cst = arith.constant dense<0.000000e+00> : vector<8x128xf32>
    %2 = tpu.matmul %0, %1, %cst {dimension_numbers = #tpu.dot_dimension_numbers<[1], [0], [0], [1], [0, 0, 1, 1], [], []>} : vector<8x16xf32>, vector<16x128xf32>, vector<8x128xf32> -> vector<8x128xf32>
    %c0_3 = arith.constant 0 : index
    %c0_4 = arith.constant 0 : index
    %3 = vector.load %arg3[%c0_3, %c0_4] : memref<1x128xf32, #tpu.memory_space<vmem>>, vector<1x128xf32>
    %4 = vector.broadcast %3 : vector<1x128xf32> to vector<8x128xf32>
    %5 = arith.addf %2, %4 : vector<8x128xf32>
    %6 = math.tanh %5 : vector<8x128xf32>
    %c0_5 = arith.constant 0 : index
    %c0_6 = arith.constant 0 : index
    %7 = vector.load %arg4[%c0_5, %c0_6] : memref<128x128xf32, #tpu.memory_space<vmem>>, vector<128x128xf32>
    %cst_7 = arith.constant dense<0.000000e+00> : vector<8x128xf32>
    %8 = tpu.matmul %6, %7, %cst_7 {dimension_numbers = #tpu.dot_dimension_numbers<[1], [0], [0], [1], [0, 0, 1, 1], [], []>} : vector<8x128xf32>, vector<128x128xf32>, vector<8x128xf32> -> vector<8x128xf32>
    %c0_8 = arith.constant 0 : index
    %c0_9 = arith.constant 0 : index
    %9 = vector.load %arg5[%c0_8, %c0_9] : memref<1x128xf32, #tpu.memory_space<vmem>>, vector<1x128xf32>
    %10 = vector.broadcast %9 : vector<1x128xf32> to vector<8x128xf32>
    %11 = arith.addf %8, %10 : vector<8x128xf32>
    %12 = math.tanh %11 : vector<8x128xf32>
    %c0_10 = arith.constant 0 : index
    %c0_11 = arith.constant 0 : index
    %13 = vector.load %arg6[%c0_10, %c0_11] : memref<128x128xf32, #tpu.memory_space<vmem>>, vector<128x128xf32>
    %cst_12 = arith.constant dense<0.000000e+00> : vector<8x128xf32>
    %14 = tpu.matmul %12, %13, %cst_12 {dimension_numbers = #tpu.dot_dimension_numbers<[1], [0], [0], [1], [0, 0, 1, 1], [], []>} : vector<8x128xf32>, vector<128x128xf32>, vector<8x128xf32> -> vector<8x128xf32>
    %c0_13 = arith.constant 0 : index
    %c0_14 = arith.constant 0 : index
    %15 = vector.load %arg7[%c0_13, %c0_14] : memref<1x128xf32, #tpu.memory_space<vmem>>, vector<1x128xf32>
    %16 = vector.broadcast %15 : vector<1x128xf32> to vector<8x128xf32>
    %17 = arith.addf %14, %16 : vector<8x128xf32>
    %18 = math.tanh %17 : vector<8x128xf32>
    %c0_15 = arith.constant 0 : index
    %c0_16 = arith.constant 0 : index
    %19 = vector.load %arg8[%c0_15, %c0_16] : memref<1x128xf32, #tpu.memory_space<vmem>>, vector<1x128xf32>
    %20 = vector.broadcast %19 : vector<1x128xf32> to vector<8x128xf32>
    %21 = arith.mulf %18, %20 : vector<8x128xf32>
    %cst_17 = arith.constant dense<0.000000e+00> : vector<8xf32>
    %22 = vector.multi_reduction <add>, %21, %cst_17 [1] : vector<8x128xf32> to vector<8xf32>
    %23 = vector.shape_cast %22 : vector<8xf32> to vector<8x1xf32>
    %c0_18 = arith.constant 0 : index
    %c0_19 = arith.constant 0 : index
    %24 = vector.load %arg9[%c0_18, %c0_19] : memref<1x1xf32, #tpu.memory_space<vmem>>, vector<1x1xf32>
    %25 = vector.broadcast %24 : vector<1x1xf32> to vector<8x1xf32>
    %26 = arith.addf %23, %25 : vector<8x1xf32>
    %c0_20 = arith.constant 0 : index
    %c0_21 = arith.constant 0 : index
    %27 = vector.load %arg10[%c0_20, %c0_21] : memref<8x1xf32, #tpu.memory_space<vmem>>, vector<8x1xf32>
    tpu.vector_store %arg10[%c0_20, %c0_21], %26 {strides = array<i32>} : memref<8x1xf32, #tpu.memory_space<vmem>>, vector<8x1xf32>,
    return
  }
  func.func @transform_0(%arg0: i32) -> (i32, i32) {
    %c0_i32 = arith.constant 0 : i32
    %c0_i32_0 = arith.constant 0 : i32
    return %arg0, %c0_i32 : i32, i32
  }
  func.func @transform_1(%arg0: i32) -> (i32, i32) {
    %c0_i32 = arith.constant 0 : i32
    %c0_i32_0 = arith.constant 0 : i32
    %c0_i32_1 = arith.constant 0 : i32
    return %c0_i32, %c0_i32_0 : i32, i32
  }
  func.func @transform_2(%arg0: i32) -> (i32, i32) {
    %c0_i32 = arith.constant 0 : i32
    %c0_i32_0 = arith.constant 0 : i32
    %c0_i32_1 = arith.constant 0 : i32
    return %c0_i32, %c0_i32_0 : i32, i32
  }
  func.func @transform_3(%arg0: i32) -> (i32, i32) {
    %c0_i32 = arith.constant 0 : i32
    %c0_i32_0 = arith.constant 0 : i32
    %c0_i32_1 = arith.constant 0 : i32
    return %c0_i32, %c0_i32_0 : i32, i32
  }
  func.func @transform_4(%arg0: i32) -> (i32, i32) {
    %c0_i32 = arith.constant 0 : i32
    %c0_i32_0 = arith.constant 0 : i32
    %c0_i32_1 = arith.constant 0 : i32
    return %c0_i32, %c0_i32_0 : i32, i32
  }
  func.func @transform_5(%arg0: i32) -> (i32, i32) {
    %c0_i32 = arith.constant 0 : i32
    %c0_i32_0 = arith.constant 0 : i32
    %c0_i32_1 = arith.constant 0 : i32
    return %c0_i32, %c0_i32_0 : i32, i32
  }
  func.func @transform_6(%arg0: i32) -> (i32, i32) {
    %c0_i32 = arith.constant 0 : i32
    %c0_i32_0 = arith.constant 0 : i32
    %c0_i32_1 = arith.constant 0 : i32
    return %c0_i32, %c0_i32_0 : i32, i32
  }
  func.func @transform_7(%arg0: i32) -> (i32, i32) {
    %c0_i32 = arith.constant 0 : i32
    %c0_i32_0 = arith.constant 0 : i32
    %c0_i32_1 = arith.constant 0 : i32
    return %c0_i32, %c0_i32_0 : i32, i32
  }
  func.func @transform_8(%arg0: i32) -> (i32, i32) {
    %c0_i32 = arith.constant 0 : i32
    %c0_i32_0 = arith.constant 0 : i32
    %c0_i32_1 = arith.constant 0 : i32
    return %c0_i32, %c0_i32_0 : i32, i32
  }
  func.func @transform_9(%arg0: i32) -> (i32, i32) {
    %c0_i32 = arith.constant 0 : i32
    %c0_i32_0 = arith.constant 0 : i32
    return %arg0, %c0_i32 : i32, i32
  }
}

</mosaic_0001>

<bundles_post_ra>
// kernel: treenet_forward.1
= control target key start
LH: loop header
LB: loop body
LE: loop exit
PB: predicated region body
PF: predicated region fallthrough
CT: control target
= control target key end

     0   :  { %s436_s0 = inlined_call_operand.hbm [shape: f32[8,16], index: 0, kind: input, shape index: {}]   ;;  %s437_s1 = inlined_call_operand.hbm [shape: f32[16,128], index: 1, kind: input, shape index: {}]   ;;  %s438_s2 = inlined_call_operand.vmem [shape: f32[1,128], index: 2, kind: input, shape index: {}]   ;;  %s439_s3 = inlined_call_operand.hbm [shape: f32[128,128], index: 3, kind: input, shape index: {}]   ;;  %s440_s4 = inlined_call_operand.vmem [shape: f32[1,128], index: 4, kind: input, shape index: {}]   ;;  %s441_s5 = inlined_call_operand.hbm [shape: f32[128,128], index: 5, kind: input, shape index: {}]   ;;  %s442_s6 = inlined_call_operand.vmem [shape: f32[1,128], index: 6, kind: input, shape index: {}]   ;;  %s443_s7 = inlined_call_operand.vmem [shape: f32[1,128], index: 7, kind: input, shape index: {}]   ;;  %s444_s8 = inlined_call_operand.<no memory space> [shape: f32[1,1], index: 8, kind: input, shape index: {}]   ;;  %s445_s9 = inlined_call_operand.vmem [shape: f32[8,1], index: 9, kind: output, shape index: {}]  }
   0x1   :  { %v14_v0 = vstv %s444_s8 }
   0x2   :  { %15 = vst [vmem:[#allocation2] sm:$0x1] %v14_v0 }
   0x3   :  { %16 = vsyncpa [#allocation4], 0 }
   0x4   :  { %17 = vsyncpa [#allocation6], 0  ;;  %s34_s13 = sshll.u32 %s437_s1, 4  ;;  %s35_s13 = int_to_ptr.hbm [resolvable:$true] %s34_s13 }
   0x5   :  { %18 = vsyncpa [#allocation9], 0  ;;  %s350_s14 = smov [#allocation5]   ;;  %s24_s18 = sshll.u32 %s436_s0, 4  ;;  %s25_s18 = int_to_ptr.hbm [resolvable:$true] %s24_s18 }
   0x6   :  { %s36_s15 = sshll.u32 %s350_s14, 4  ;;  %s351_s19 = smov 128   ;;  %s37_s15 = int_to_ptr.vmem [resolvable:$true] %s36_s15 }
   0x7   :  { %s352_s20 = smov 8   ;;  %s353_s8 = smov [#allocation3]  }
   0x8   :  { %42 = dma.hbm_to_vmem [thread:$0]  %s35_s13, 256, %s37_s15, [#allocation6], %s351_s19, %s351_s19, %s352_s20  }
   0x9   :  { %s26_s21 = sshll.u32 %s353_s8, 4  ;;  %s49_s24 = sshll.u32 %s439_s3, 4  ;;  %s27_s21 = int_to_ptr.vmem [resolvable:$true] %s26_s21  ;;  %s50_s24 = int_to_ptr.hbm [resolvable:$true] %s49_s24 }
   0xa   :  { %29 = dma.hbm_to_vmem [thread:$0]  %s25_s18, 128, %s27_s21, [#allocation4]  }
   0xb   :  { %s64_s26 = sshll.u32 %s441_s5, 4  ;;  %s354_s27 = smov [#allocation7]   ;;  %s65_s26 = int_to_ptr.hbm [resolvable:$true] %s64_s26 }
   0xc   :  { %s51_s28 = sshll.u32 %s354_s27, 4  ;;  %s355_s0 = smov [#allocation8]   ;;  %s52_s28 = int_to_ptr.vmem [resolvable:$true] %s51_s28 }
   0xd   :  { %57 = dma.hbm_to_vmem [thread:$0]  %s50_s24, 2048, %s52_s28, [#allocation6], %s351_s19, %s351_s19, %s352_s20  }
   0xe   :  { %s66_s29 = sshll.u32 %s355_s0, 4  ;;  %s67_s29 = int_to_ptr.vmem [resolvable:$true] %s66_s29 }
   0xf   :  { %72 = dma.hbm_to_vmem [thread:$0]  %s65_s26, 2048, %s67_s29, [#allocation9], %s351_s19, %s351_s19, %s352_s20  }
  0x10   :  { %344 = dma.done.wait [#allocation4], 128  }
  0x11   :  { %345 = vsyncadd [#allocation4], 4294967168 }
  0x12   :  { %346 = dma.done.wait [#allocation6], 2304  }
  0x13   :  { %347 = vsyncadd [#allocation6], 4294964992 }
  0x14   :  { %348 = dma.done.wait [#allocation9], 2048  }
  0x15   :  { %349 = vsyncadd [#allocation9], 4294965248  ;;  %v97_v1 = vld [vmem:[#allocation5 + $0x8] sm:$0xff]  ;;  %v96_v2 = vld [vmem:[#allocation5] sm:$0xff]  ;;  %vm102_vm0 = vcmask 130048   ;;  %vm221_vm1 = vcmask 7168  }
  0x16   :  { %120 = vmatpush.msra.mxu0 %v97_v1  ;;  %v95_v3 = vld [vmem:[#allocation3] sm:$0xff]  ;;  %v142_v4 = vld [vmem:[#allocation7 + $0x78] sm:$0xff]  ;;  %v141_v5 = vld [vmem:[#allocation7 + $0x70] sm:$0xff] }
  0x17   :  { %147 = vmatpush.msra.mxu1 %v142_v4  ;;  %v140_v6 = vld [vmem:[#allocation7 + $0x68] sm:$0xff]  ;;  %v139_v7 = vld [vmem:[#allocation7 + $0x60] sm:$0xff]  ;;  %v138_v8 = vld [vmem:[#allocation7 + $0x58] sm:$0xff] }
  0x18   :  { %121 = vmatpush.msra.mxu0 %v96_v2  ;;  %v137_v9 = vld [vmem:[#allocation7 + $0x50] sm:$0xff]  ;;  %v136_v10 = vld [vmem:[#allocation7 + $0x48] sm:$0xff]  ;;  %v135_v11 = vld [vmem:[#allocation7 + $0x40] sm:$0xff] }
  0x19   :  { %230 = vmatmul.msk.f32.vlgmr.msra.gmra.mxu0 %vm102_vm0, %v95_v3  ;;  %148 = vmatpush.msra.mxu1 %v141_v5  ;;  %v134_v12 = vld [vmem:[#allocation7 + $0x38] sm:$0xff]  ;;  %v133_v13 = vld [vmem:[#allocation7 + $0x30] sm:$0xff]  ;;  %v132_v14 = vld [vmem:[#allocation7 + $0x28] sm:$0xff] }
  0x1a   :  { %v131_v15 = vld [vmem:[#allocation7 + $0x20] sm:$0xff]  ;;  %v130_v16 = vld [vmem:[#allocation7 + $0x18] sm:$0xff]  ;;  %v129_v17 = vld [vmem:[#allocation7 + $0x10] sm:$0xff] }
  0x1b   :  { %149 = vmatpush.msra.mxu1 %v140_v6  ;;  %v128_v18 = vld [vmem:[#allocation7 + $0x8] sm:$0xff]  ;;  %v127_v19 = vld [vmem:[#allocation7] sm:$0xff]  ;;  %v183_v20 = vld [vmem:[#allocation8 + $0x78] sm:$0xff] }
  0x1c   :  { %v182_v21 = vld [vmem:[#allocation8 + $0x70] sm:$0xff]  ;;  %188 = vmatpush.msra.mxu2 %v183_v20  ;;  %v181_v22 = vld [vmem:[#allocation8 + $0x68] sm:$0xff]  ;;  %v180_v23 = vld [vmem:[#allocation8 + $0x60] sm:$0xff] }
  0x1d   :  { %150 = vmatpush.msra.mxu1 %v139_v7  ;;  %v179_v24 = vld [vmem:[#allocation8 + $0x58] sm:$0xff]  ;;  %v178_v25 = vld [vmem:[#allocation8 + $0x50] sm:$0xff]  ;;  %v177_v26 = vld [vmem:[#allocation8 + $0x48] sm:$0xff] }
  0x1e   :  { %189 = vmatpush.msra.mxu2 %v182_v21  ;;  %v176_v27 = vld [vmem:[#allocation8 + $0x40] sm:$0xff]  ;;  %v175_v28 = vld [vmem:[#allocation8 + $0x38] sm:$0xff]  ;;  %v174_v29 = vld [vmem:[#allocation8 + $0x30] sm:$0xff] }
  0x1f   :  { %151 = vmatpush.msra.mxu1 %v138_v8  ;;  %v173_v30 = vld [vmem:[#allocation8 + $0x28] sm:$0xff]  ;;  %v237_v31 = vld [vmem:[%s438_s2] ss:$0 sm:$0xff]  ;;  %v171_v36 = vld [vmem:[#allocation8 + $0x18] sm:$0xff] }
  0x20   :  { %190 = vmatpush.msra.mxu2 %v181_v22  ;;  %v172_v35 = vld [vmem:[#allocation8 + $0x20] sm:$0xff]  ;;  %v170_v37 = vld [vmem:[#allocation8 + $0x10] sm:$0xff]  ;;  %v169_v38 = vld [vmem:[#allocation8 + $0x8] sm:$0xff] }
  0x21   :  { %152 = vmatpush.msra.mxu1 %v137_v9  ;;  %v168_v39 = vld [vmem:[#allocation8] sm:$0xff] }
  0x22   :  { %191 = vmatpush.msra.mxu2 %v180_v23  ;;  %v238_v40 = vld [vmem:[%s440_s4] ss:$0 sm:$0xff] }
  0x23   :  { %153 = vmatpush.msra.mxu1 %v136_v10  ;;  %v239_v44 = vld [vmem:[%s442_s6] ss:$0 sm:$0xff] }
  0x24   :  { %192 = vmatpush.msra.mxu2 %v179_v24  ;;  %v240_v47 = vld [vmem:[%s443_s7] ss:$0 sm:$0xff] }
  0x25   :  { %154 = vmatpush.msra.mxu1 %v135_v11  ;;  %v241_v50 = vld [vmem:[#allocation2] ss:$0 sm:$0xff] }
  0x26   :  { %193 = vmatpush.msra.mxu2 %v178_v25 }
  0x27   :  { %155 = vmatpush.msra.mxu1 %v134_v12 }
  0x28   :  { %194 = vmatpush.msra.mxu2 %v177_v26 }
  0x29   :  { %156 = vmatpush.msra.mxu1 %v133_v13 }
  0x2a   :  { %195 = vmatpush.msra.mxu2 %v176_v27 }
  0x2b   :  { %157 = vmatpush.msra.mxu1 %v132_v14 }
  0x2c   :  { %196 = vmatpush.msra.mxu2 %v175_v28 }
  0x2d   :  { %158 = vmatpush.msra.mxu1 %v131_v15 }
  0x2e   :  { %197 = vmatpush.msra.mxu2 %v174_v29 }
  0x2f   :  { %159 = vmatpush.msra.mxu1 %v130_v16 }
  0x30   :  { %198 = vmatpush.msra.mxu2 %v173_v30 }
  0x31   :  { %160 = vmatpush.msra.mxu1 %v129_v17 }
  0x32   :  { %199 = vmatpush.msra.mxu2 %v172_v35 }
  0x33   :  { %161 = vmatpush.msra.mxu1 %v128_v18 }
  0x34   :  { %200 = vmatpush.msra.mxu2 %v171_v36 }
  0x35   :  { %162 = vmatpush.msra.mxu1 %v127_v19 }
  0x36   :  { %201 = vmatpush.msra.mxu2 %v170_v37 }
  0x38   :  { %202 = vmatpush.msra.mxu2 %v169_v38 }
  0x3a   :  { %203 = vmatpush.msra.mxu2 %v168_v39 }
  0x96   :  { %v123_v32 = vpop.f32.mrf.mxu0 }
  0x97   :  { %v124_v33 = vadd.f32 %v237_v31, %v123_v32 }
  0x99   :  { %242 = vtanh.f32 %v124_v33 }
  0x9f   :  { %v243_v34 = vpop.eup %242 }
  0xa0   :  { %163 = vmatmul.f32.vlgmr.msra.gmra.mxu1 %v243_v34 }
 0x11d   :  { %v164_v41 = vpop.f32.mrf.mxu1 }
 0x11e   :  { %v165_v42 = vadd.f32 %v238_v40, %v164_v41 }
 0x120   :  { %244 = vtanh.f32 %v165_v42 }
 0x126   :  { %v245_v43 = vpop.eup %244 }
 0x127   :  { %204 = vmatmul.f32.vlgmr.msra.gmra.mxu2 %v245_v43 }
 0x1aa   :  { %v205_v45 = vpop.f32.mrf.mxu2 }
 0x1ab   :  { %v206_v46 = vadd.f32 %v239_v44, %v205_v45 }
 0x1ad   :  { %246 = vtanh.f32 %v206_v46 }
 0x1b3   :  { %v247_v48 = vpop.eup %246 }
 0x1b4   :  { %v213_v49 = vmul.f32 %v247_v48, %v240_v47 }
 0x1b6   :  { %214 = vadd.xlane.f32.xlu0 %v213_v49 }
 0x229   :  { %v215_v51 = vpop.xlane.xlu0 %214 }
 0x22a   :  { %v220_v52 = vadd.f32 %v241_v50, %v215_v51 }
 0x22c   :  { %222 = vst.msk [vmem:[%s445_s9] sm:$0xff] %vm221_vm1, %v220_v52 }
 0x22d   :  { %227 = vsyncpa [#allocation4], 1 }
 0x22e   :  { %228 = vsyncpa [#allocation6], 1 }
 0x22f   :  { %229 = vsyncpa [#allocation9], 1 }

</bundles_post_ra>
